<compile_context>
chip_gen: v7x
topology: tpu7x:2x2x1
jax: 0.10.0
libtpu: 0.0.40
codegen_flags: <defaults>
</compile_context>

<pallas_src>
import jax
import jax.numpy as jnp
from jax.experimental import pallas as pl
from jax.experimental.pallas import tpu as pltpu

_MIB = 1024 * 1024


# --------------------------------------------------------------------------------------
# Fused path: scores + softmax + weighted aggregation in one kernel launch.
# --------------------------------------------------------------------------------------
def _fused_kernel(emb_ref, wt_ref, b_ref, att_ref, out_ref):
    # emb_ref: (M, N, D)  wt_ref: (D, D)  b_ref/att_ref: (1, D)  out_ref: (N, D)
    M, N, D = emb_ref.shape
    inv_n = 1.0 / N

    # One batched MXU matmul over all metapaths' rows (amortizes systolic fill/drain).
    # bf16 MXU inputs, f32 accumulation (HBM traffic stays f32).  N % 8 == 0 keeps the
    # leading-dim collapse layout-preserving.
    x = emb_ref[...].reshape(M * N, D)
    h = jnp.tanh(
        jnp.dot(x.astype(jnp.bfloat16), wt_ref[...].astype(jnp.bfloat16),
                preferred_element_type=jnp.float32) + b_ref[...]
    )                                                                   # (M*N, D) f32

    # Per-metapath score s_m = att . mean_n h_m (sublane-reduce first, then lane-reduce).
    scores = []
    for m in range(M):
        row = jnp.sum(h[m * N:(m + 1) * N, :], axis=0, keepdims=True) * inv_n   # (1, D)
        scores.append(jnp.sum(row * att_ref[...], axis=1, keepdims=True))       # (1, 1)

    # Softmax over the M scores on (1, 1) tiles.
    s_max = scores[0]
    for m in range(1, M):
        s_max = jnp.maximum(s_max, scores[m])
    exps = [jnp.exp(s - s_max) for s in scores]
    denom = exps[0]
    for m in range(1, M):
        denom = denom + exps[m]
    inv_denom = pl.reciprocal(denom, approx=False)                              # (1, 1)

    # Weighted aggregation: z = sum_m beta_m * embeds[m].
    acc = emb_ref[0] * (exps[0] * inv_denom)
    for m in range(1, M):
        acc = acc + emb_ref[m] * (exps[m] * inv_denom)
    out_ref[...] = acc


# --------------------------------------------------------------------------------------
# Two-pass tiled path (large N): phase 1 = per-tile node-sums of tanh(fc(x)), M folded
# into the block so each grid step does ONE tall (M*tile_n, D) matmul.
# --------------------------------------------------------------------------------------
def _score_tiled_kernel(emb_ref, wt_ref, b_ref, sp_ref):
    # grid = (num_nt,).  emb_ref: (M, tile_n, D)  wt_ref: (D, D)  b_ref: (1, D)
    # sp_ref: (1, M, D) per-tile partial node-sums (lane-dense, D = full width).
    M, TN, D = emb_ref.shape
    x = emb_ref[...].reshape(M * TN, D)          # tile_n % 8 == 0 -> layout preserving
    h = jnp.tanh(
        jnp.dot(x.astype(jnp.bfloat16), wt_ref[...].astype(jnp.bfloat16),
                preferred_element_type=jnp.float32) + b_ref[...]
    )                                                                   # (M*TN, D) f32
    # Sublane-reduce over nodes per metapath; att dot / softmax are finished in XLA.
    sp_ref[0] = jnp.sum(h.reshape(M, TN, D), axis=1)                    # (M, D)


# Phase 2 = weighted aggregation, M folded into the block; beta via scalar prefetch.
def _agg_tiled_kernel(beta_ref, emb_ref, out_ref):
    # grid = (num_nt,).  beta_ref: SMEM (M,)  emb_ref: (M, tile_n, D)  out_ref: (tile_n, D)
    M = emb_ref.shape[0]
    acc = emb_ref[0] * beta_ref[0]
    for m in range(1, M):
        acc = acc + emb_ref[m] * beta_ref[m]
    out_ref[...] = acc                           # single unmasked lane-dense store


# --------------------------------------------------------------------------------------
# Wrapper.
# --------------------------------------------------------------------------------------
def _pick_tile_n(n, cap):
    """Largest node-tile (multiple of 8, <= cap).  Returns (tile_n, padded_n)."""
    cap = max(8, (cap // 8) * 8)
    if n % 8 == 0:
        for cand in range(min(cap, n), 0, -8):
            if n % cand == 0:
                return cand, n                   # divides N exactly, no padding
    tile = min(cap, ((n + 7) // 8) * 8)
    n_pad = ((n + tile - 1) // tile) * tile
    return tile, n_pad


def semantic_attention(embeds, w_t, b, att, *,
                       max_fused_vmem_bytes=12 * _MIB, tile_n_cap=1024):
    """z_agg = sum_i softmax_i(att . mean_n tanh(embeds @ w_t + b)) * embeds[i]."""
    M, N, D = embeds.shape
    embeds = embeds.astype(jnp.float32)
    w_t = w_t.astype(jnp.float32)
    b = b.reshape(1, D).astype(jnp.float32)
    att = att.reshape(1, D).astype(jnp.float32)

    # ---------------- fused single-kernel path (small / medium M*N*D) ----------------
    # Estimate includes double-buffered embeds block, the f32 tanh intermediate, bf16
    # matmul copies, and output/aggregation temporaries (stays under v5e's 16 MiB scoped
    # default at the 12 MiB cap).
    fused_vmem_est = (4 * M * N * D * 3 + 2 * M * N * D
                      + 12 * N * D + 12 * D * D + 4096)
    if (N % 8 == 0) and (fused_vmem_est <= max_fused_vmem_bytes):
        vmem_limit = int(min(32 * _MIB, max(8 * _MIB, fused_vmem_est + 2 * _MIB)))
        return pl.pallas_call(
            _fused_kernel,
            out_shape=jax.ShapeDtypeStruct((N, D), jnp.float32),
            grid_spec=pltpu.PrefetchScalarGridSpec(
                num_scalar_prefetch=0,
                grid=(1,),
                in_specs=[
                    pl.BlockSpec((M, N, D), lambda i: (0, 0, 0)),
                    pl.BlockSpec((D, D), lambda i: (0, 0)),
                    pl.BlockSpec((1, D), lambda i: (0, 0)),
                    pl.BlockSpec((1, D), lambda i: (0, 0)),
                ],
                out_specs=pl.BlockSpec((N, D), lambda i: (0, 0)),
            ),
            compiler_params=pltpu.CompilerParams(
                dimension_semantics=("arbitrary",),
                vmem_limit_bytes=vmem_limit),
        )(embeds, w_t, b, att)

    # ---------------- two-pass tiled path (large N) ----------------
    tile_n, n_pad = _pick_tile_n(N, tile_n_cap)
    num_nt = n_pad // tile_n
    emb_p = embeds if n_pad == N else jnp.pad(
        embeds, ((0, 0), (0, n_pad - N), (0, 0)))   # zero-pad; corrected analytically below

    emb_block_bytes = 4 * M * tile_n * D
    vmem_limit = int(min(32 * _MIB, max(8 * _MIB, 4 * emb_block_bytes + 2 * _MIB)))

    # Phase 1: per-tile, per-metapath node-sums of tanh(fc(x)); grid over node tiles only
    # ("parallel" -> v7x megacore splits node tiles evenly across both TensorCores).
    partial = pl.pallas_call(
        _score_tiled_kernel,
        out_shape=jax.ShapeDtypeStruct((num_nt, M, D), jnp.float32),
        grid_spec=pltpu.PrefetchScalarGridSpec(
            num_scalar_prefetch=0,
            grid=(num_nt,),
            in_specs=[
                pl.BlockSpec((M, tile_n, D), lambda nt: (0, nt, 0)),
                pl.BlockSpec((D, D), lambda nt: (0, 0)),
                pl.BlockSpec((1, D), lambda nt: (0, 0)),
            ],
            out_specs=pl.BlockSpec((1, M, D), lambda nt: (nt, 0, 0)),
        ),
        compiler_params=pltpu.CompilerParams(
            dimension_semantics=("parallel",),
            vmem_limit_bytes=vmem_limit),
    )(emb_p, w_t, b)

    # Finish the reduction + softmax in plain XLA (M*num_nt*D floats is tiny).
    sp_sum = jnp.sum(partial, axis=0)                      # (M, D): sum_n tanh(fc(x)) incl. pads
    scores = sp_sum @ att.reshape(D)                       # (M,)
    if n_pad != N:
        # Each zero-padded row contributes exactly att . tanh(b); subtract analytically.
        scores = scores - (n_pad - N) * jnp.sum(att.reshape(-1) * jnp.tanh(b.reshape(-1)))
    beta = jax.nn.softmax(scores * (1.0 / N))              # mean over the real N, then softmax

    # Phase 2: z = sum_m beta_m * embeds[m]; M folded into the block, one write per tile.
    z_pad = pl.pallas_call(
        _agg_tiled_kernel,
        out_shape=jax.ShapeDtypeStruct((n_pad, D), jnp.float32),
        grid_spec=pltpu.PrefetchScalarGridSpec(
            num_scalar_prefetch=1,
            grid=(num_nt,),
            in_specs=[
                pl.BlockSpec((M, tile_n, D), lambda nt, beta_ref: (0, nt, 0)),
            ],
            out_specs=pl.BlockSpec((tile_n, D), lambda nt, beta_ref: (nt, 0)),
        ),
        compiler_params=pltpu.CompilerParams(
            dimension_semantics=("parallel",),
            vmem_limit_bytes=vmem_limit),
    )(beta, emb_p)

    return z_pad if n_pad == N else z_pad[:N]


# --------------------------------------------------------------------------------------
# Pure-JAX reference (mirrors the PyTorch module).
# --------------------------------------------------------------------------------------
def _reference(embeds, w_t, b, att):
    h = jnp.tanh(embeds @ w_t + b)                 # (M, N, D)
    sp = h.mean(axis=1)                            # (M, D)
    scores = sp @ att.reshape(-1)                  # (M,)
    beta = jax.nn.softmax(scores)
    return jnp.sum(embeds * beta[:, None, None], axis=0)


if __name__ == "__main__":
    key = jax.random.PRNGKey(0)
    D = 128                                         # hidden_dim
    gain = 1.414

    k_w, k_b, k_a, k_e1, k_e2, k_e3 = jax.random.split(key, 6)

    # Deterministic parameter init matching the module's __init__ distributions:
    std_fc = gain * (2.0 / (D + D)) ** 0.5                       # xavier_normal_ (D, D)
    fc_weight = std_fc * jax.random.normal(k_w, (D, D), dtype=jnp.float32)   # (out, in)
    w_t = fc_weight.T                                            # fc(x) = x @ w_t + b
    bound = 1.0 / (D ** 0.5)                                     # nn.Linear default bias init
    b = jax.random.uniform(k_b, (1, D), minval=-bound, maxval=bound, dtype=jnp.float32)
    std_att = gain * (2.0 / (1 + D)) ** 0.5                      # xavier_normal_ (1, D)
    att = std_att * jax.random.normal(k_a, (1, D), dtype=jnp.float32)

    TOL = dict(atol=3e-3, rtol=3e-3)   # bf16 MXU inputs / f32 accumulation vs f32 reference

    # --- test 1: small shape -> fused single-kernel path ---
    M1, N1 = 3, 8
    embeds1 = jax.random.normal(k_e1, (M1, N1, D), dtype=jnp.float32)
    z1 = jax.block_until_ready(semantic_attention(embeds1, w_t, b, att))
    assert z1.shape == (N1, D)
    assert jnp.allclose(z1, _reference(embeds1, w_t, b, att), **TOL), "fused path mismatch"

    # --- test 2: larger N, fused budget forced to 0 -> M-folded tiled path, 4 node tiles ---
    M2, N2 = 3, 512
    embeds2 = jax.random.normal(k_e2, (M2, N2, D), dtype=jnp.float32)
    z2 = jax.block_until_ready(
        semantic_attention(embeds2, w_t, b, att, max_fused_vmem_bytes=0, tile_n_cap=128))
    assert z2.shape == (N2, D)
    assert jnp.allclose(z2, _reference(embeds2, w_t, b, att), **TOL), "tiled path mismatch"

    # --- test 3: N not a multiple of 8 -> padded tail + analytic score correction ---
    M3, N3 = 3, 100
    embeds3 = jax.random.normal(k_e3, (M3, N3, D), dtype=jnp.float32)
    z3 = jax.block_until_ready(
        semantic_attention(embeds3, w_t, b, att, max_fused_vmem_bytes=0))
    assert z3.shape == (N3, D)
    assert jnp.allclose(z3, _reference(embeds3, w_t, b, att), **TOL), "padded path mismatch"

    print("KERNEL_OK")
</pallas_src>

<mosaic_0001>
module attributes {stable_mosaic.version = 11 : i64} {
  func.func @_fused_kernel(%arg0: i32, %arg1: memref<3x8x128xf32, #tpu.memory_space<vmem>>, %arg2: memref<128x128xf32, #tpu.memory_space<vmem>>, %arg3: memref<1x128xf32, #tpu.memory_space<vmem>>, %arg4: memref<1x128xf32, #tpu.memory_space<vmem>>, %arg5: memref<8x128xf32, #tpu.memory_space<vmem>>) attributes {dimension_semantics = [#tpu.dimension_semantics<arbitrary>], iteration_bounds = array<i64: 1>, scalar_prefetch = 0 : i64, scratch_operands = 0 : i64, tpu.core_type = #tpu.core_type<tc>, window_params = [{pipeline_mode = #tpu.pipeline_mode<synchronous>, transform_indices = @transform_0, window_bounds = array<i64: 3, 8, 128>}, {pipeline_mode = #tpu.pipeline_mode<synchronous>, transform_indices = @transform_1, window_bounds = array<i64: 128, 128>}, {pipeline_mode = #tpu.pipeline_mode<synchronous>, transform_indices = @transform_2, window_bounds = array<i64: 1, 128>}, {pipeline_mode = #tpu.pipeline_mode<synchronous>, transform_indices = @transform_3, window_bounds = array<i64: 1, 128>}, {pipeline_mode = #tpu.pipeline_mode<synchronous>, transform_indices = @transform_4, window_bounds = array<i64: 8, 128>}]} {
    %c0 = arith.constant 0 : index
    %c0_0 = arith.constant 0 : index
    %c0_1 = arith.constant 0 : index
    %0 = vector.load %arg1[%c0, %c0_0, %c0_1] : memref<3x8x128xf32, #tpu.memory_space<vmem>>, vector<3x8x128xf32>
    %1 = vector.shape_cast %0 : vector<3x8x128xf32> to vector<24x128xf32>
    %2 = arith.truncf %1 : vector<24x128xf32> to vector<24x128xbf16>
    %c0_2 = arith.constant 0 : index
    %c0_3 = arith.constant 0 : index
    %3 = vector.load %arg2[%c0_2, %c0_3] : memref<128x128xf32, #tpu.memory_space<vmem>>, vector<128x128xf32>
    %4 = arith.truncf %3 : vector<128x128xf32> to vector<128x128xbf16>
    %cst = arith.constant dense<0.000000e+00> : vector<24x128xf32>
    %5 = tpu.matmul %2, %4, %cst {dimension_numbers = #tpu.dot_dimension_numbers<[1], [0], [0], [1], [0, 0, 1, 1], [], []>} : vector<24x128xbf16>, vector<128x128xbf16>, vector<24x128xf32> -> vector<24x128xf32>
    %c0_4 = arith.constant 0 : index
    %c0_5 = arith.constant 0 : index
    %6 = vector.load %arg3[%c0_4, %c0_5] : memref<1x128xf32, #tpu.memory_space<vmem>>, vector<1x128xf32>
    %7 = vector.broadcast %6 : vector<1x128xf32> to vector<24x128xf32>
    %8 = arith.addf %5, %7 : vector<24x128xf32>
    %9 = math.tanh %8 : vector<24x128xf32>
    %10 = vector.extract_strided_slice %9 {offsets = [0, 0], sizes = [8, 128], strides = [1, 1]} : vector<24x128xf32> to vector<8x128xf32>
    %cst_6 = arith.constant dense<0.000000e+00> : vector<128xf32>
    %11 = vector.multi_reduction <add>, %10, %cst_6 [0] : vector<8x128xf32> to vector<128xf32>
    %12 = vector.shape_cast %11 : vector<128xf32> to vector<1x128xf32>
    %cst_7 = arith.constant 1.250000e-01 : f32
    %13 = vector.broadcast %cst_7 : f32 to vector<1x128xf32>
    %14 = arith.mulf %12, %13 : vector<1x128xf32>
    %c0_8 = arith.constant 0 : index
    %c0_9 = arith.constant 0 : index
    %15 = vector.load %arg4[%c0_8, %c0_9] : memref<1x128xf32, #tpu.memory_space<vmem>>, vector<1x128xf32>
    %16 = arith.mulf %14, %15 : vector<1x128xf32>
    %cst_10 = arith.constant dense<0.000000e+00> : vector<1xf32>
    %17 = vector.multi_reduction <add>, %16, %cst_10 [1] : vector<1x128xf32> to vector<1xf32>
    %18 = vector.shape_cast %17 : vector<1xf32> to vector<1x1xf32>
    %19 = vector.extract_strided_slice %9 {offsets = [8, 0], sizes = [8, 128], strides = [1, 1]} : vector<24x128xf32> to vector<8x128xf32>
    %cst_11 = arith.constant dense<0.000000e+00> : vector<128xf32>
    %20 = vector.multi_reduction <add>, %19, %cst_11 [0] : vector<8x128xf32> to vector<128xf32>
    %21 = vector.shape_cast %20 : vector<128xf32> to vector<1x128xf32>
    %cst_12 = arith.constant 1.250000e-01 : f32
    %22 = vector.broadcast %cst_12 : f32 to vector<1x128xf32>
    %23 = arith.mulf %21, %22 : vector<1x128xf32>
    %c0_13 = arith.constant 0 : index
    %c0_14 = arith.constant 0 : index
    %24 = vector.load %arg4[%c0_13, %c0_14] : memref<1x128xf32, #tpu.memory_space<vmem>>, vector<1x128xf32>
    %25 = arith.mulf %23, %24 : vector<1x128xf32>
    %cst_15 = arith.constant dense<0.000000e+00> : vector<1xf32>
    %26 = vector.multi_reduction <add>, %25, %cst_15 [1] : vector<1x128xf32> to vector<1xf32>
    %27 = vector.shape_cast %26 : vector<1xf32> to vector<1x1xf32>
    %28 = vector.extract_strided_slice %9 {offsets = [16, 0], sizes = [8, 128], strides = [1, 1]} : vector<24x128xf32> to vector<8x128xf32>
    %cst_16 = arith.constant dense<0.000000e+00> : vector<128xf32>
    %29 = vector.multi_reduction <add>, %28, %cst_16 [0] : vector<8x128xf32> to vector<128xf32>
    %30 = vector.shape_cast %29 : vector<128xf32> to vector<1x128xf32>
    %cst_17 = arith.constant 1.250000e-01 : f32
    %31 = vector.broadcast %cst_17 : f32 to vector<1x128xf32>
    %32 = arith.mulf %30, %31 : vector<1x128xf32>
    %c0_18 = arith.constant 0 : index
    %c0_19 = arith.constant 0 : index
    %33 = vector.load %arg4[%c0_18, %c0_19] : memref<1x128xf32, #tpu.memory_space<vmem>>, vector<1x128xf32>
    %34 = arith.mulf %32, %33 : vector<1x128xf32>
    %cst_20 = arith.constant dense<0.000000e+00> : vector<1xf32>
    %35 = vector.multi_reduction <add>, %34, %cst_20 [1] : vector<1x128xf32> to vector<1xf32>
    %36 = vector.shape_cast %35 : vector<1xf32> to vector<1x1xf32>
    %37 = arith.maximumf %18, %27 : vector<1x1xf32>
    %38 = arith.maximumf %37, %36 : vector<1x1xf32>
    %39 = arith.subf %18, %38 : vector<1x1xf32>
    %40 = math.exp %39 : vector<1x1xf32>
    %41 = arith.subf %27, %38 : vector<1x1xf32>
    %42 = math.exp %41 : vector<1x1xf32>
    %43 = arith.subf %36, %38 : vector<1x1xf32>
    %44 = math.exp %43 : vector<1x1xf32>
    %45 = arith.addf %40, %42 : vector<1x1xf32>
    %46 = arith.addf %45, %44 : vector<1x1xf32>
    %47 = tpu.reciprocal %46 : vector<1x1xf32> -> vector<1x1xf32>
    %c0_21 = arith.constant 0 : index
    %c0_22 = arith.constant 0 : index
    %c0_23 = arith.constant 0 : index
    %48 = vector.load %arg1[%c0_21, %c0_22, %c0_23] : memref<3x8x128xf32, #tpu.memory_space<vmem>>, vector<1x8x128xf32>
    %49 = vector.shape_cast %48 : vector<1x8x128xf32> to vector<8x128xf32>
    %50 = arith.mulf %40, %47 : vector<1x1xf32>
    %51 = vector.broadcast %50 : vector<1x1xf32> to vector<8x128xf32>
    %52 = arith.mulf %49, %51 : vector<8x128xf32>
    %c1 = arith.constant 1 : index
    %c0_24 = arith.constant 0 : index
    %c0_25 = arith.constant 0 : index
    %53 = vector.load %arg1[%c1, %c0_24, %c0_25] : memref<3x8x128xf32, #tpu.memory_space<vmem>>, vector<1x8x128xf32>
    %54 = vector.shape_cast %53 : vector<1x8x128xf32> to vector<8x128xf32>
    %55 = arith.mulf %42, %47 : vector<1x1xf32>
    %56 = vector.broadcast %55 : vector<1x1xf32> to vector<8x128xf32>
    %57 = arith.mulf %54, %56 : vector<8x128xf32>
    %58 = arith.addf %52, %57 : vector<8x128xf32>
    %c2 = arith.constant 2 : index
    %c0_26 = arith.constant 0 : index
    %c0_27 = arith.constant 0 : index
    %59 = vector.load %arg1[%c2, %c0_26, %c0_27] : memref<3x8x128xf32, #tpu.memory_space<vmem>>, vector<1x8x128xf32>
    %60 = vector.shape_cast %59 : vector<1x8x128xf32> to vector<8x128xf32>
    %61 = arith.mulf %44, %47 : vector<1x1xf32>
    %62 = vector.broadcast %61 : vector<1x1xf32> to vector<8x128xf32>
    %63 = arith.mulf %60, %62 : vector<8x128xf32>
    %64 = arith.addf %58, %63 : vector<8x128xf32>
    %c0_28 = arith.constant 0 : index
    %c0_29 = arith.constant 0 : index
    %65 = vector.load %arg5[%c0_28, %c0_29] : memref<8x128xf32, #tpu.memory_space<vmem>>, vector<8x128xf32>
    tpu.vector_store %arg5[%c0_28, %c0_29], %64 {strides = array<i32>} : memref<8x128xf32, #tpu.memory_space<vmem>>, vector<8x128xf32>,
    return
  }
  func.func @transform_0(%arg0: i32) -> (i32, i32, i32) {
    %c0_i32 = arith.constant 0 : i32
    %c0_i32_0 = arith.constant 0 : i32
    %c0_i32_1 = arith.constant 0 : i32
    %c0_i32_2 = arith.constant 0 : i32
    return %c0_i32, %c0_i32_0, %c0_i32_1 : i32, i32, i32
  }
  func.func @transform_1(%arg0: i32) -> (i32, i32) {
    %c0_i32 = arith.constant 0 : i32
    %c0_i32_0 = arith.constant 0 : i32
    %c0_i32_1 = arith.constant 0 : i32
    return %c0_i32, %c0_i32_0 : i32, i32
  }
  func.func @transform_2(%arg0: i32) -> (i32, i32) {
    %c0_i32 = arith.constant 0 : i32
    %c0_i32_0 = arith.constant 0 : i32
    %c0_i32_1 = arith.constant 0 : i32
    return %c0_i32, %c0_i32_0 : i32, i32
  }
  func.func @transform_3(%arg0: i32) -> (i32, i32) {
    %c0_i32 = arith.constant 0 : i32
    %c0_i32_0 = arith.constant 0 : i32
    %c0_i32_1 = arith.constant 0 : i32
    return %c0_i32, %c0_i32_0 : i32, i32
  }
  func.func @transform_4(%arg0: i32) -> (i32, i32) {
    %c0_i32 = arith.constant 0 : i32
    %c0_i32_0 = arith.constant 0 : i32
    %c0_i32_1 = arith.constant 0 : i32
    return %c0_i32, %c0_i32_0 : i32, i32
  }
}

</mosaic_0001>

<bundles_post_ra>
// kernel: tpu_custom_call.1
= control target key start
LH: loop header
LB: loop body
LE: loop exit
PB: predicated region body
PF: predicated region fallthrough
CT: control target
= control target key end

     0   :  { %9 = vsyncpa [#allocation3], 0  ;;  %s432_s0 = inlined_call_operand.hbm [shape: f32[3,8,128], index: 0, kind: input, shape index: {}]   ;;  %s433_s1 = inlined_call_operand.hbm [shape: f32[128,128], index: 1, kind: input, shape index: {}]   ;;  %s434_s2 = inlined_call_operand.vmem [shape: f32[1,128], index: 2, kind: input, shape index: {}]   ;;  %s435_s3 = inlined_call_operand.vmem [shape: f32[1,128], index: 3, kind: input, shape index: {}]   ;;  %s436_s4 = inlined_call_operand.hbm [shape: f32[8,128], index: 4, kind: output, shape index: {}]  }
   0x1   :  { %10 = vsyncpa [#allocation6], 0 }
   0x2   :  { %11 = vsyncpa [#allocation4], 0  ;;  %s347_s15 = smov [#allocation2]   ;;  %s275_s19 = scalar_lea.hbm %s432_s0, 384 }
   0x3   :  { %s17_s16 = sshll.u32 %s347_s15, 4  ;;  %p276_p0 = scmp.ne.s32.totalorder %s432_s0, %s275_s19  ;;  %s18_s16 = int_to_ptr.vmem [resolvable:$true] %s17_s16 }
   0x4   :  { %p279_p1 = scmp.lt.u32.totalorder %s275_s19, %s432_s0 }
   0x6   :  { %p281_p2 = pnand %p279_p1, %p276_p0 }
   0x8   :  { %284 = shalt.err (!%p281_p2)
}
   0x9   :  { %s285_s24 = scalar_lea.vmem %s18_s16, 384  ;;  %p290_p4 = scmp.lt.s32.totalorder %s18_s16, %s18_s16 }
   0xa   :  { %p286_p3 = scmp.ne.s32.totalorder %s18_s16, %s285_s24  ;;  %p291_p5 = scmp.lt.s32.totalorder %s285_s24, %s285_s24 }
   0xc   :  { %p292_p6 = por %p291_p5, %p290_p4 }
   0xe   :  { %p293_p7 = pnand %p292_p6, %p286_p3 }
  0x10   :  { %296 = shalt.err (!%p293_p7)
}
  0x11   :  { %s348_s25 = smov 128   ;;  %s349_s26 = smov 8  }
  0x12   :  { %23 = dma.hbm_to_vmem [thread:$0]  %s432_s0, 384, %s18_s16, [#allocation3], %s348_s25, %s348_s25, %s349_s26  }
  0x13   :  { %s350_s29 = smov [#allocation5]   ;;  %s297_s7 = scalar_lea.hbm %s433_s1, 2048 }
  0x14   :  { %s29_s30 = sshll.u32 %s350_s29, 4  ;;  %p298_p8 = scmp.ne.s32.totalorder %s433_s1, %s297_s7  ;;  %s30_s30 = int_to_ptr.vmem [resolvable:$true] %s29_s30 }
  0x15   :  { %p301_p9 = scmp.lt.u32.totalorder %s297_s7, %s433_s1 }
  0x17   :  { %p303_p10 = pnand %p301_p9, %p298_p8 }
  0x19   :  { %306 = shalt.err (!%p303_p10)
}
  0x1a   :  { %s307_s12 = scalar_lea.vmem %s30_s30, 2048  ;;  %p312_p12 = scmp.lt.s32.totalorder %s30_s30, %s30_s30 }
  0x1b   :  { %p308_p11 = scmp.ne.s32.totalorder %s30_s30, %s307_s12  ;;  %p313_p13 = scmp.lt.s32.totalorder %s307_s12, %s307_s12 }
  0x1d   :  { %p314_p0 = por %p313_p13, %p312_p12 }
  0x1f   :  { %p315_p1 = pnand %p314_p0, %p308_p11 }
  0x21   :  { %318 = shalt.err (!%p315_p1)
}
  0x22   :  { %35 = dma.hbm_to_vmem [thread:$0]  %s433_s1, 2048, %s30_s30, [#allocation6], %s348_s25, %s348_s25, %s349_s26  }
  0x23   :  { %341 = dma.done.wait [#allocation3], 384  }
  0x24   :  { %342 = vsyncadd [#allocation3], 4294966912 }
  0x25   :  { %343 = dma.done.wait [#allocation6], 2048  }
  0x26   :  { %344 = vsyncadd [#allocation6], 4294965248  ;;  %v52_v0 = vld [vmem:[#allocation5] sm:$0xff]  ;;  %v53_v1 = vld [vmem:[#allocation5 + $0x8] sm:$0xff]  ;;  %vm143_vm0 = vcmask 1040384  }
  0x27   :  { %v54_v2 = vld [vmem:[#allocation5 + $0x10] sm:$0xff]  ;;  %v68_v3 = vpack.c.bf16 %v53_v1, %v52_v0  ;;  %v55_v4 = vld [vmem:[#allocation5 + $0x18] sm:$0xff]  ;;  %v56_v6 = vld [vmem:[#allocation5 + $0x20] sm:$0xff] }
  0x28   :  { %v69_v5 = vpack.c.bf16 %v55_v4, %v54_v2  ;;  %v57_v7 = vld [vmem:[#allocation5 + $0x28] sm:$0xff]  ;;  %v403_v10 = vld [vmem:[#allocation2 + $0x8] sm:$0xff]  ;;  %v59_v12 = vld [vmem:[#allocation5 + $0x38] sm:$0xff] }
  0x29   :  { %236 = vmatprep.subr.bf16.mxu0 %v68_v3  ;;  %v70_v8 = vpack.c.bf16 %v57_v7, %v56_v6  ;;  %v401_v9 = vld [vmem:[#allocation2] sm:$0xff]  ;;  %v58_v11 = vld [vmem:[#allocation5 + $0x30] sm:$0xff]  ;;  %v60_v15 = vld [vmem:[#allocation5 + $0x40] sm:$0xff] }
  0x2a   :  { %237 = vmatpush3.bf16.msra.mxu0 %v68_v3  ;;  %v50_v13 = vpack.c.bf16 %v403_v10, %v401_v9  ;;  %v71_v14 = vpack.c.bf16 %v59_v12, %v58_v11  ;;  %v61_v16 = vld [vmem:[#allocation5 + $0x48] sm:$0xff]  ;;  %v62_v18 = vld [vmem:[#allocation5 + $0x50] sm:$0xff]  ;;  %v63_v19 = vld [vmem:[#allocation5 + $0x58] sm:$0xff] }
  0x2b   :  { %238 = vmatprep.subr.bf16.mxu0 %v69_v5  ;;  %v72_v17 = vpack.c.bf16 %v61_v16, %v60_v15  ;;  %v73_v20 = vpack.c.bf16 %v63_v19, %v62_v18  ;;  %v64_v21 = vld [vmem:[#allocation5 + $0x60] sm:$0xff]  ;;  %v65_v22 = vld [vmem:[#allocation5 + $0x68] sm:$0xff]  ;;  %v66_v24 = vld [vmem:[#allocation5 + $0x70] sm:$0xff] }
  0x2c   :  { %252 = vmatprep.mubr.bf16.mxu0 %v50_v13  ;;  %v74_v23 = vpack.c.bf16 %v65_v22, %v64_v21  ;;  %v67_v25 = vld [vmem:[#allocation5 + $0x78] sm:$0xff]  ;;  %v225_v29 = vld [vmem:[%s434_s2] ss:$0 sm:$0xff]  ;;  %v185_v22 = vlaneseq }
  0x2d   :  { %v75_v26 = vpack.c.bf16 %v67_v25, %v66_v24  ;;  %v407_v27 = vld [vmem:[#allocation2 + $0x10] sm:$0xff]  ;;  %v141_v55 = vld [vmem:[%s435_s3] sm:$0x1]  ;;  %s351_s3 = smov [#allocation7]  }
  0x2e   :  { %239 = vmatpush3.bf16.msra.mxu0 %v69_v5  ;;  %v51_v28 = vpack.c.bf16 %v407_v27, %v407_v27  ;;  %s215_s16 = sshll.u32 %s351_s3, 4  ;;  %s216_s16 = int_to_ptr.vmem [resolvable:$true] %s215_s16 }
  0x2f   :  { %240 = vmatprep.subr.bf16.mxu0 %v70_v8  ;;  %s319_s17 = scalar_lea.vmem %s216_s16, 128  ;;  %p324_p3 = scmp.lt.s32.totalorder %s216_s16, %s216_s16 }
  0x30   :  { %p320_p2 = scmp.ne.s32.totalorder %s216_s16, %s319_s17  ;;  %p325_p4 = scmp.lt.s32.totalorder %s319_s17, %s319_s17 }
  0x32   :  { %241 = vmatpush3.bf16.msra.mxu0 %v70_v8  ;;  %p326_p5 = por %p325_p4, %p324_p3 }
  0x33   :  { %242 = vmatprep.subr.bf16.mxu0 %v71_v14 }
  0x34   :  { %p327_p6 = pnand %p326_p5, %p320_p2 }
  0x36   :  { %243 = vmatpush3.bf16.msra.mxu0 %v71_v14 }
  0x37   :  { %244 = vmatprep.subr.bf16.mxu0 %v72_v17 }
  0x3a   :  { %245 = vmatpush3.bf16.msra.mxu0 %v72_v17 }
  0x3b   :  { %246 = vmatprep.subr.bf16.mxu0 %v73_v20 }
  0x3e   :  { %247 = vmatpush3.bf16.msra.mxu0 %v73_v20 }
  0x3f   :  { %248 = vmatprep.subr.bf16.mxu0 %v74_v23 }
  0x42   :  { %249 = vmatpush3.bf16.msra.mxu0 %v74_v23  ;;  %v186_v23 = vshrl.u32 %v185_v22, 7 }
  0x43   :  { %250 = vmatprep.subr.bf16.mxu0 %v75_v26 }
  0x44   :  { %v187_v24 = vsub.s32 0, %v186_v23 }
  0x46   :  { %251 = vmatpush3.bf16.msra.mxu0 %v75_v26 }
  0x49   :  { %253 = vmatmul.mubr.bf16.vlgmr.msra.gmra.mrb[0].mxu0 %v51_v28 }
 0x11c   :  { %v254_v30 = vpop.f32.mrb[0].mxu0 }
 0x11d   :  { %v126_v31 = vadd.f32 %v254_v30, %v225_v29  ;;  %v117_v32 = vpop.f32.mrb[1].mxu0 }
 0x11e   :  { %v118_v33 = vadd.f32 %v225_v29, %v117_v32  ;;  %v255_v34 = vpop.f32.mrb[2].mxu0 }
 0x11f   :  { %261 = vtanh.f32 %v126_v31  ;;  %v120_v35 = vpop.f32.mrb[3].mxu0 }
 0x120   :  { %263 = vtanh.f32 %v118_v33  ;;  %v121_v36 = vadd.f32 %v225_v29, %v120_v35 }
 0x122   :  { %265 = vtanh.f32 %v121_v36 }
 0x129   :  { %v262_v37 = vpop.eup %261 }
 0x12a   :  { %v264_v38 = vpop.eup %263  ;;  %v158_v39 = vrot.slane %v262_v37, 4 }
 0x12b   :  { %v134_v40 = vrot.slane %v264_v38, 4 }
 0x12c   :  { %v266_v41 = vpop.eup %265  ;;  %v159_v42 = vadd.f32 %v262_v37, %v158_v39 }
 0x12d   :  { %v135_v43 = vadd.f32 %v264_v38, %v134_v40  ;;  %v147_v44 = vrot.slane %v266_v41, 4 }
 0x12e   :  { %v160_v45 = vrot.slane %v159_v42, 2 }
 0x12f   :  { %v136_v46 = vrot.slane %v135_v43, 2  ;;  %v148_v47 = vadd.f32 %v266_v41, %v147_v44 }
 0x130   :  { %v161_v48 = vadd.f32 %v160_v45, %v159_v42 }
 0x131   :  { %v137_v49 = vadd.f32 %v136_v46, %v135_v43  ;;  %v149_v50 = vrot.slane %v148_v47, 2 }
 0x132   :  { %v162_v51 = vrot.slane %v161_v48, 1 }
 0x133   :  { %v138_v52 = vrot.slane %v137_v49, 1  ;;  %v150_v53 = vadd.f32 %v149_v50, %v148_v47 }
 0x134   :  { %v163_v54 = vadd.f32 %v162_v51, %v161_v48 }
 0x135   :  { %v139_v56 = vadd.f32 %v138_v52, %v137_v49  ;;  %v151_v57 = vrot.slane %v150_v53, 1 }
 0x136   :  { %v164_v58 = vmul.f32 0.125, %v163_v54 }
 0x137   :  { %v140_v59 = vmul.f32 0.125, %v139_v56  ;;  %v152_v60 = vadd.f32 %v151_v57, %v150_v53 }
 0x138   :  { %v165_v61 = vmul.f32 %v164_v58, %v141_v55 }
 0x139   :  { %v142_v62 = vmul.f32 %v141_v55, %v140_v59  ;;  %v153_v63 = vmul.f32 0.125, %v152_v60 }
 0x13a   :  { %v166_v0 = vsel %vm143_vm0, %v165_v61, 0.0 }
 0x13b   :  { %167 = vadd.xlane.f32.xlu1 %v166_v0  ;;  %v144_v1 = vsel %vm143_vm0, %v142_v62, 0.0  ;;  %v154_v2 = vmul.f32 %v153_v63, %v141_v55 }
 0x13c   :  { %145 = vadd.xlane.f32.xlu0 %v144_v1 }
 0x13d   :  { %v155_v3 = vsel %vm143_vm0, %v154_v2, 0.0 }
 0x140   :  { %156 = vadd.xlane.f32.xlu0 %v155_v3 }
 0x1c8   :  { %v168_v7 = vpop.xlane.xlu1 %167 }
 0x1c9   :  { %v146_v4 = vpop.xlane.xlu0 %145 }
 0x1cd   :  { %v157_v5 = vpop.xlane.xlu0 %156 }
 0x1ce   :  { %v169_v6 = vmax.f32 %v146_v4, %v157_v5 }
 0x1d0   :  { %v170_v8 = vmax.f32 %v169_v6, %v168_v7 }
 0x1d2   :  { %v171_v11 = vsub.f32 %v146_v4, %v170_v8  ;;  %v174_v12 = vsub.f32 %v157_v5, %v170_v8  ;;  %v177_v13 = vsub.f32 %v168_v7, %v170_v8 }
 0x1d4   :  { %v172_v14 = vmul.f32 1.442695, %v171_v11  ;;  %v175_v15 = vmul.f32 1.442695, %v174_v12  ;;  %v178_v16 = vmul.f32 1.442695, %v177_v13 }
 0x1d6   :  { %267 = vpow2.f32 %v172_v14 }
 0x1d7   :  { %269 = vpow2.f32 %v175_v15 }
 0x1d8   :  { %271 = vpow2.f32 %v178_v16 }
 0x1e0   :  { %v268_v17 = vpop.eup %267 }
 0x1e1   :  { %v270_v18 = vpop.eup %269 }
 0x1e2   :  { %v180_v19 = vadd.f32 %v270_v18, %v268_v17  ;;  %v272_v20 = vpop.eup %271 }
 0x1e4   :  { %v181_v21 = vadd.f32 %v272_v20, %v180_v19 }
 0x1e6   :  { %273 = vrcp.f32 %v181_v21 }
 0x1f0   :  { %v274_v25 = vpop.eup %273 }
 0x1f1   :  { %v184_v26 = vmul.f32 %v274_v25, %v268_v17  ;;  %v192_v28 = vmul.f32 %v274_v25, %v270_v18  ;;  %v201_v29 = vmul.f32 %v274_v25, %v272_v20 }
 0x1f3   :  { %v188_v30 = vrot.slane %v184_v26, %v187_v24  ;;  %v196_v31 = vrot.slane %v192_v28, %v187_v24  ;;  %v205_v32 = vrot.slane %v201_v29, %v187_v24 }
 0x1f5   :  { %v189_v33 = vmul.f32 %v188_v30, %v401_v9  ;;  %v197_v34 = vmul.f32 %v196_v31, %v403_v10  ;;  %v206_v36 = vmul.f32 %v205_v32, %v407_v27 }
 0x1f7   :  { %v198_v35 = vadd.f32 %v197_v34, %v189_v33 }
 0x1f9   :  { %v207_v37 = vadd.f32 %v206_v36, %v198_v35 }
 0x1fb   :  { %208 = vst [vmem:[#allocation7] sm:$0xff] %v207_v37 }
 0x1fc   :  { %330 = shalt.err (!%p327_p6)
}
 0x1fd   :  { %s331_s20 = scalar_lea.hbm %s436_s4, 128 }
 0x1fe   :  { %p332_p7 = scmp.ne.s32.totalorder %s436_s4, %s331_s20  ;;  %p335_p8 = scmp.lt.u32.totalorder %s331_s20, %s436_s4 }
 0x200   :  { %p337_p9 = pnand %p335_p8, %p332_p7 }
 0x202   :  { %340 = shalt.err (!%p337_p9)
}
 0x203   :  { %218 = dma.vmem_to_hbm [thread:$0]  %s216_s16, 128, %s436_s4, [#allocation4]  }
 0x204   :  { %345 = dma.done.wait [#allocation4], 128  }
 0x205   :  { %346 = vsyncadd [#allocation4], 4294967168 }
 0x206   :  { %222 = vsyncpa [#allocation3], 1 }
 0x207   :  { %223 = vsyncpa [#allocation6], 1 }
 0x208   :  { %224 = vsyncpa [#allocation4], 1 }

</bundles_post_ra>
